<compile_context>
chip_gen: v7x
topology: tpu7x:2x2x1
jax: 0.10.0
libtpu: 0.0.40
codegen_flags: <defaults>
</compile_context>

<pallas_src>
import functools

import jax
import jax.numpy as jnp
from jax.experimental import pallas as pl
from jax.experimental.pallas import tpu as pltpu

BN_EPS = 1e-5  # nn.BatchNorm1d default


def _round_up(x, m):
    return (x + m - 1) // m * m


def _pad2d(a, rows, cols):
    r, c = a.shape
    return jnp.pad(a, ((0, rows - r), (0, cols - c)))


# --------------------------------------------------------------------------
# Pass 1: per-feature sum / sum-of-squares of h1 = fc1(state) + b1
# --------------------------------------------------------------------------
def _bn_stats_kernel(state_ref, w1_ref, b1_ref, sum_ref, sumsq_ref,
                     *, batch, block_b):
    t = pl.program_id(0)

    @pl.when(t == 0)
    def _():
        sum_ref[...] = jnp.zeros_like(sum_ref)
        sumsq_ref[...] = jnp.zeros_like(sumsq_ref)

    x = state_ref[...].astype(jnp.bfloat16)
    h1 = jnp.dot(x, w1_ref[...], preferred_element_type=jnp.float32) + b1_ref[...]

    # Mask rows that only exist because of batch padding.
    row = jax.lax.broadcasted_iota(jnp.int32, (block_b, 1), 0) + t * block_b
    h1 = jnp.where(row < batch, h1, 0.0)

    sum_ref[...] += jnp.sum(h1, axis=0, keepdims=True)
    sumsq_ref[...] += jnp.sum(h1 * h1, axis=0, keepdims=True)


# --------------------------------------------------------------------------
# Pass 2: full forward for one batch tile using the global BN statistics
# --------------------------------------------------------------------------
def _actor_fwd_kernel(sum_ref, sumsq_ref, state_ref,
                      w1_ref, b1_ref, gamma_ref, beta_ref,
                      w2_ref, b2_ref, w3_ref, b3_ref, w4_ref, b4_ref,
                      out_ref, *, batch):
    inv_b = 1.0 / float(batch)
    mean = sum_ref[...] * inv_b
    var = jnp.maximum(sumsq_ref[...] * inv_b - mean * mean, 0.0)  # biased var
    scale = jax.lax.rsqrt(var + BN_EPS) * gamma_ref[...]
    shift = beta_ref[...] - mean * scale

    # fc1 + BatchNorm1d (fused scale/shift) + ReLU
    x = state_ref[...].astype(jnp.bfloat16)
    h1 = jnp.dot(x, w1_ref[...], preferred_element_type=jnp.float32) + b1_ref[...]
    h1 = jnp.maximum(h1 * scale + shift, 0.0)

    # fc2 + ReLU
    h2 = jnp.dot(h1.astype(jnp.bfloat16), w2_ref[...],
                 preferred_element_type=jnp.float32) + b2_ref[...]
    h2 = jnp.maximum(h2, 0.0)

    # fc3 + ReLU
    h3 = jnp.dot(h2.astype(jnp.bfloat16), w3_ref[...],
                 preferred_element_type=jnp.float32) + b3_ref[...]
    h3 = jnp.maximum(h3, 0.0)

    # fc4 + tanh
    h4 = jnp.dot(h3.astype(jnp.bfloat16), w4_ref[...],
                 preferred_element_type=jnp.float32) + b4_ref[...]
    out_ref[...] = jnp.tanh(h4).astype(out_ref.dtype)


# --------------------------------------------------------------------------
# Wrapper
# --------------------------------------------------------------------------
def actor_forward(state, params, *, block_b=256):
    """state: (B, state_size) f32 -> actions (B, action_size) f32."""
    B, S = state.shape
    H1 = params["w1"].shape[1]
    H2 = params["w2"].shape[1]
    H3 = params["w3"].shape[1]
    A = params["w4"].shape[1]
    assert H1 % 128 == 0 and H2 % 128 == 0 and H3 % 128 == 0, \
        "hidden sizes must be multiples of 128"

    f32 = jnp.float32
    Kp = _round_up(S, 128)            # pad fc1 contraction dim
    Ap = _round_up(A, 128)            # lane-dense output / fc4 N dim
    tb = min(block_b, _round_up(B, 128))
    Bp = _round_up(B, tb)
    n_tiles = Bp // tb

    state_p = _pad2d(state.astype(f32), Bp, Kp)

    # bf16 weights for the MXU (f32 accumulate); f32 biases / BN params.
    w1 = _pad2d(params["w1"], Kp, H1).astype(jnp.bfloat16)
    w2 = params["w2"].astype(jnp.bfloat16)
    w3 = params["w3"].astype(jnp.bfloat16)
    w4 = _pad2d(params["w4"], H3, Ap).astype(jnp.bfloat16)
    b1 = params["b1"].astype(f32)
    b2 = params["b2"].astype(f32)
    b3 = params["b3"].astype(f32)
    b4 = _pad2d(params["b4"].astype(f32), 1, Ap)
    gamma = params["gamma"].astype(f32)
    beta = params["beta"].astype(f32)

    def resident(shape):
        # Constant block index -> stays VMEM-resident across grid steps.
        return pl.BlockSpec(shape, lambda t: (0, 0))

    # ---- pass 1: full-batch BN statistics (accumulator pattern) ----
    bn_sum, bn_sumsq = pl.pallas_call(
        functools.partial(_bn_stats_kernel, batch=B, block_b=tb),
        grid=(n_tiles,),
        in_specs=[pl.BlockSpec((tb, Kp), lambda t: (t, 0)),
                  resident((Kp, H1)),
                  resident((1, H1))],
        out_specs=(resident((1, H1)), resident((1, H1))),
        out_shape=(jax.ShapeDtypeStruct((1, H1), f32),
                   jax.ShapeDtypeStruct((1, H1), f32)),
        compiler_params=pltpu.CompilerParams(
            dimension_semantics=("arbitrary",)),
    )(state_p, w1, b1)

    # ---- pass 2: tiled, pipelined forward ----
    flops = 2 * Bp * (Kp * H1 + H1 * H2 + H2 * H3 + H3 * Ap)
    bytes_accessed = (state_p.size * 4 + Bp * Ap * 4
                      + (w1.size + w2.size + w3.size + w4.size) * 2
                      + (4 * H1 + H2 + H3 + Ap) * 4)
    out_p = pl.pallas_call(
        functools.partial(_actor_fwd_kernel, batch=B),
        grid=(n_tiles,),
        in_specs=[resident((1, H1)), resident((1, H1)),
                  pl.BlockSpec((tb, Kp), lambda t: (t, 0)),
                  resident((Kp, H1)), resident((1, H1)),
                  resident((1, H1)), resident((1, H1)),
                  resident((H1, H2)), resident((1, H2)),
                  resident((H2, H3)), resident((1, H3)),
                  resident((H3, Ap)), resident((1, Ap))],
        out_specs=pl.BlockSpec((tb, Ap), lambda t: (t, 0)),
        out_shape=jax.ShapeDtypeStruct((Bp, Ap), f32),
        compiler_params=pltpu.CompilerParams(
            dimension_semantics=("parallel",)),
        cost_estimate=pl.CostEstimate(flops=flops,
                                      transcendentals=Bp * Ap + H1,
                                      bytes_accessed=bytes_accessed),
    )(bn_sum, bn_sumsq, state_p,
      w1, b1, gamma, beta, w2, b2, w3, b3, w4, b4)

    return out_p[:B, :A]


# --------------------------------------------------------------------------
# Init (mirrors Actor.reset_parameters) and pure-JAX reference
# --------------------------------------------------------------------------
def init_actor_params(key, state_size, action_size,
                      fc1_units=512, fc2_units=256, fc3_units=128):
    k1, k2, k3, k4 = jax.random.split(key, 4)

    def hidden_uniform(k, fan_in_pt, shape):
        # hidden_init uses weight.size()[0] == out_features in the reference.
        lim = 1.0 / jnp.sqrt(jnp.float32(fan_in_pt))
        return jax.random.uniform(k, shape, jnp.float32, minval=-lim, maxval=lim)

    # weights stored as (in, out) == transposed PyTorch layout
    w1 = hidden_uniform(k1, fc1_units, (state_size, fc1_units))
    w2 = hidden_uniform(k2, fc2_units, (fc1_units, fc2_units))
    w3 = hidden_uniform(k3, fc3_units, (fc2_units, fc3_units))
    w4 = jax.random.uniform(k4, (fc3_units, action_size), jnp.float32,
                            minval=-0.003, maxval=0.003)

    return dict(
        w1=w1, b1=jnp.full((1, fc1_units), 0.1, jnp.float32),
        gamma=jnp.ones((1, fc1_units), jnp.float32),
        beta=jnp.zeros((1, fc1_units), jnp.float32),
        w2=w2, b2=jnp.full((1, fc2_units), 0.1, jnp.float32),
        w3=w3, b3=jnp.full((1, fc3_units), 0.1, jnp.float32),
        w4=w4, b4=jnp.full((1, action_size), 0.1, jnp.float32),
    )


def actor_reference(state, params):
    """Pure-f32 JAX reference (PyTorch semantics, training-mode BN)."""
    h1 = state @ params["w1"] + params["b1"]
    mean = h1.mean(axis=0, keepdims=True)
    var = ((h1 - mean) ** 2).mean(axis=0, keepdims=True)   # biased, as BN does
    h1 = (h1 - mean) / jnp.sqrt(var + BN_EPS) * params["gamma"] + params["beta"]
    h1 = jnp.maximum(h1, 0.0)
    h2 = jnp.maximum(h1 @ params["w2"] + params["b2"], 0.0)
    h3 = jnp.maximum(h2 @ params["w3"] + params["b3"], 0.0)
    return jnp.tanh(h3 @ params["w4"] + params["b4"])


if __name__ == "__main__":
    # Module-default hidden sizes (512/256/128); small, "awkward" batch/state
    # dims to exercise batch tiling, BN-stat accumulation and lane padding.
    batch = 200
    state_size = 33
    action_size = 4

    key = jax.random.PRNGKey(0)
    k_state, k_params = jax.random.split(key)

    state = jax.random.normal(k_state, (batch, state_size), jnp.float32)
    params = init_actor_params(k_params, state_size, action_size)

    out = actor_forward(state, params, block_b=128)
    out = jax.block_until_ready(out)

    ref = actor_reference(state, params)
    assert out.shape == (batch, action_size)
    max_err = float(jnp.max(jnp.abs(out - ref)))
    # bf16 matmul inputs (f32 accumulate) -> looser tolerance than pure f32.
    assert max_err < 2e-2, f"mismatch vs reference, max abs err = {max_err}"

    print("KERNEL_OK")
</pallas_src>

<mosaic_0001>
module attributes {stable_mosaic.version = 11 : i64} {
  func.func @_bn_stats_kernel(%arg0: i32, %arg1: memref<128x128xf32, #tpu.memory_space<vmem>>, %arg2: memref<128x512xbf16, #tpu.memory_space<vmem>>, %arg3: memref<1x512xf32, #tpu.memory_space<vmem>>, %arg4: memref<1x512xf32, #tpu.memory_space<vmem>>, %arg5: memref<1x512xf32, #tpu.memory_space<vmem>>) attributes {dimension_semantics = [#tpu.dimension_semantics<arbitrary>], iteration_bounds = array<i64: 2>, scalar_prefetch = 0 : i64, scratch_operands = 0 : i64, tpu.core_type = #tpu.core_type<tc>, window_params = [{transform_indices = @transform_0, window_bounds = array<i64: 128, 128>}, {pipeline_mode = #tpu.pipeline_mode<synchronous>, transform_indices = @transform_1, window_bounds = array<i64: 128, 512>}, {pipeline_mode = #tpu.pipeline_mode<synchronous>, transform_indices = @transform_2, window_bounds = array<i64: 1, 512>}, {pipeline_mode = #tpu.pipeline_mode<synchronous>, transform_indices = @transform_3, window_bounds = array<i64: 1, 512>}, {pipeline_mode = #tpu.pipeline_mode<synchronous>, transform_indices = @transform_4, window_bounds = array<i64: 1, 512>}]} {
    %c0_i32 = arith.constant 0 : i32
    %0 = arith.cmpi eq, %arg0, %c0_i32 : i32
    %1 = arith.extui %0 : i1 to i32
    %c0_i32_0 = arith.constant 0 : i32
    %2 = arith.cmpi ne, %1, %c0_i32_0 : i32
    scf.if %2 {
      %cst_17 = arith.constant 0.000000e+00 : f32
      %31 = vector.broadcast %cst_17 : f32 to vector<1x512xf32>
      %c0_18 = arith.constant 0 : index
      %c0_19 = arith.constant 0 : index
      %32 = vector.load %arg4[%c0_18, %c0_19] : memref<1x512xf32, #tpu.memory_space<vmem>>, vector<1x512xf32>
      tpu.vector_store %arg4[%c0_18, %c0_19], %31 {strides = array<i32>} : memref<1x512xf32, #tpu.memory_space<vmem>>, vector<1x512xf32>,
      %cst_20 = arith.constant 0.000000e+00 : f32
      %33 = vector.broadcast %cst_20 : f32 to vector<1x512xf32>
      %c0_21 = arith.constant 0 : index
      %c0_22 = arith.constant 0 : index
      %34 = vector.load %arg5[%c0_21, %c0_22] : memref<1x512xf32, #tpu.memory_space<vmem>>, vector<1x512xf32>
      tpu.vector_store %arg5[%c0_21, %c0_22], %33 {strides = array<i32>} : memref<1x512xf32, #tpu.memory_space<vmem>>, vector<1x512xf32>,
    } else {
    }
    %c0 = arith.constant 0 : index
    %c0_1 = arith.constant 0 : index
    %3 = vector.load %arg1[%c0, %c0_1] : memref<128x128xf32, #tpu.memory_space<vmem>>, vector<128x128xf32>
    %4 = arith.truncf %3 : vector<128x128xf32> to vector<128x128xbf16>
    %c0_2 = arith.constant 0 : index
    %c0_3 = arith.constant 0 : index
    %5 = vector.load %arg2[%c0_2, %c0_3] : memref<128x512xbf16, #tpu.memory_space<vmem>>, vector<128x512xbf16>
    %cst = arith.constant dense<0.000000e+00> : vector<128x512xf32>
    %6 = tpu.matmul %4, %5, %cst {dimension_numbers = #tpu.dot_dimension_numbers<[1], [0], [0], [1], [0, 0, 1, 1], [], []>} : vector<128x128xbf16>, vector<128x512xbf16>, vector<128x512xf32> -> vector<128x512xf32>
    %c0_4 = arith.constant 0 : index
    %c0_5 = arith.constant 0 : index
    %7 = vector.load %arg3[%c0_4, %c0_5] : memref<1x512xf32, #tpu.memory_space<vmem>>, vector<1x512xf32>
    %8 = vector.broadcast %7 : vector<1x512xf32> to vector<128x512xf32>
    %9 = arith.addf %6, %8 : vector<128x512xf32>
    %10 = tpu.iota {dimensions = array<i32: 0>} : vector<128x1xi32>
    %c128_i32 = arith.constant 128 : i32
    %11 = arith.muli %arg0, %c128_i32 : i32
    %12 = vector.broadcast %11 : i32 to vector<128x1xi32>
    %13 = arith.addi %10, %12 : vector<128x1xi32>
    %c200_i32 = arith.constant 200 : i32
    %14 = vector.broadcast %c200_i32 : i32 to vector<128x1xi32>
    %15 = arith.cmpi slt, %13, %14 : vector<128x1xi32>
    %cst_6 = arith.constant 0.000000e+00 : f32
    %16 = vector.shape_cast %15 : vector<128x1xi1> to vector<128x1xi1>
    %17 = vector.broadcast %16 : vector<128x1xi1> to vector<128x512xi1>
    %18 = vector.broadcast %cst_6 : f32 to vector<128x512xf32>
    %19 = arith.select %17, %9, %18 : vector<128x512xi1>, vector<128x512xf32>
    %c0_7 = arith.constant 0 : index
    %c0_8 = arith.constant 0 : index
    %20 = vector.load %arg4[%c0_7, %c0_8] : memref<1x512xf32, #tpu.memory_space<vmem>>, vector<1x512xf32>
    %cst_9 = arith.constant dense<0.000000e+00> : vector<512xf32>
    %21 = vector.multi_reduction <add>, %19, %cst_9 [0] : vector<128x512xf32> to vector<512xf32>
    %22 = vector.shape_cast %21 : vector<512xf32> to vector<1x512xf32>
    %23 = arith.addf %20, %22 : vector<1x512xf32>
    %c0_10 = arith.constant 0 : index
    %c0_11 = arith.constant 0 : index
    %24 = vector.load %arg4[%c0_10, %c0_11] : memref<1x512xf32, #tpu.memory_space<vmem>>, vector<1x512xf32>
    tpu.vector_store %arg4[%c0_10, %c0_11], %23 {strides = array<i32>} : memref<1x512xf32, #tpu.memory_space<vmem>>, vector<1x512xf32>,
    %c0_12 = arith.constant 0 : index
    %c0_13 = arith.constant 0 : index
    %25 = vector.load %arg5[%c0_12, %c0_13] : memref<1x512xf32, #tpu.memory_space<vmem>>, vector<1x512xf32>
    %26 = arith.mulf %19, %19 : vector<128x512xf32>
    %cst_14 = arith.constant dense<0.000000e+00> : vector<512xf32>
    %27 = vector.multi_reduction <add>, %26, %cst_14 [0] : vector<128x512xf32> to vector<512xf32>
    %28 = vector.shape_cast %27 : vector<512xf32> to vector<1x512xf32>
    %29 = arith.addf %25, %28 : vector<1x512xf32>
    %c0_15 = arith.constant 0 : index
    %c0_16 = arith.constant 0 : index
    %30 = vector.load %arg5[%c0_15, %c0_16] : memref<1x512xf32, #tpu.memory_space<vmem>>, vector<1x512xf32>
    tpu.vector_store %arg5[%c0_15, %c0_16], %29 {strides = array<i32>} : memref<1x512xf32, #tpu.memory_space<vmem>>, vector<1x512xf32>,
    return
  }
  func.func @transform_0(%arg0: i32) -> (i32, i32) {
    %c0_i32 = arith.constant 0 : i32
    %c0_i32_0 = arith.constant 0 : i32
    return %arg0, %c0_i32 : i32, i32
  }
  func.func @transform_1(%arg0: i32) -> (i32, i32) {
    %c0_i32 = arith.constant 0 : i32
    %c0_i32_0 = arith.constant 0 : i32
    %c0_i32_1 = arith.constant 0 : i32
    return %c0_i32, %c0_i32_0 : i32, i32
  }
  func.func @transform_2(%arg0: i32) -> (i32, i32) {
    %c0_i32 = arith.constant 0 : i32
    %c0_i32_0 = arith.constant 0 : i32
    %c0_i32_1 = arith.constant 0 : i32
    return %c0_i32, %c0_i32_0 : i32, i32
  }
  func.func @transform_3(%arg0: i32) -> (i32, i32) {
    %c0_i32 = arith.constant 0 : i32
    %c0_i32_0 = arith.constant 0 : i32
    %c0_i32_1 = arith.constant 0 : i32
    return %c0_i32, %c0_i32_0 : i32, i32
  }
  func.func @transform_4(%arg0: i32) -> (i32, i32) {
    %c0_i32 = arith.constant 0 : i32
    %c0_i32_0 = arith.constant 0 : i32
    %c0_i32_1 = arith.constant 0 : i32
    return %c0_i32, %c0_i32_0 : i32, i32
  }
}

</mosaic_0001>

<bundles_post_ra>
// kernel: tpu_custom_call.1
= control target key start
LH: loop header
LB: loop body
LE: loop exit
PB: predicated region body
PF: predicated region fallthrough
CT: control target
= control target key end

     0   :  { %10 = vsyncpa [#allocation3], 0  ;;  %s2164_s0 = inlined_call_operand.hbm [shape: f32[256,128], index: 0, kind: input, shape index: {}]   ;;  %s2165_s1 = inlined_call_operand.hbm [shape: bf16[128,512], index: 1, kind: input, shape index: {}]   ;;  %s2166_s2 = inlined_call_operand.vmem [shape: f32[1,512], index: 2, kind: input, shape index: {}]   ;;  %s2167_s3 = inlined_call_operand.hbm [shape: f32[1,512], index: 3, kind: output, shape index: {0}]   ;;  %s2168_s4 = inlined_call_operand.hbm [shape: f32[1,512], index: 4, kind: output, shape index: {1}]  }
   0x1   :  { %12 = vsyncpa [#allocation3 + $0x1], 0 }
   0x2   :  { %13 = vsyncpa [#allocation6], 0 }
   0x3   :  { %14 = vsyncpa [#allocation4], 0 }
   0x4   :  { %15 = vsyncpa [#allocation9], 0  ;;  %s1594_s15 = smov 0   ;;  %s1596_s16 = smov 0  }
   0x5   :  { %s1598_s17 = smov 0   ;;  %s1600_s18 = smov 0  }
   0x6 LB: > { %s1613_s19 = sadd.s32 4294967295, %s1556_s18   ;;  %p41_p0 = scmp.ne.s32.totalorder %s1548_s16, %s1544_s15  ;;  %s1556_s18 = sphi %s1600_s18, %s2186_s18   ;;  %s1552_s17 = sphi %s1598_s17, %s2185_s17   ;;  %s1548_s16 = sphi %s1596_s16, %s2184_s16   ;;  %s1544_s15 = sphi %s1594_s15, %s2183_s15  }
   0x7   : > { %p2169_p1 = scmp.eq.s32.totalorder %s1613_s19, 0  ;;  %p1231_p2 = scmp.ge.s32.totalorder %s1556_s18, 1 }
   0x8   : > { %p136_p3 = scmp.lt.s32.totalorder %s1556_s18, 3  ;;  %s1558_s22 = smov [#allocation5]  }
   0x9   : > { %p1622_p5 = por %p2169_p1, %p41_p0  ;;  %s148_s23 = sshll.u32 %s1558_s22, 4  ;;  %s149_s23 = int_to_ptr.vmem [resolvable:$true] %s148_s23 }
   0xa   : > { %p1626_p6 = pnand %p1231_p2, %p136_p3  ;;  %s1639_s25 = sadd.s32 1, %s1556_s18  }
   0xb   : > { %s2172_s20 = scalar_select %p1622_p5, 1, 0 }
   0xc   : > { %s2173_s21 = scalar_select %p1626_p6, 1, 0 }
   0xd   : > { %p1295_p7 = pneg %p1626_p6  ;;  %s28_s26 = sadd.s32 1, %s1552_s17 }
   0xe   : > { %s25_s27 = ssub.s32 %s1556_s18, %s1639_s25  ;;  %s1400_s30 = scalar_lea.hbm %s2165_s1, 4096 }
   0xf   : > { %p1634_p8 = pnand %p1295_p7, %p2169_p1  ;;  %p1401_p9 = scmp.ne.s32.totalorder %s2165_s1, %s1400_s30 }
  0x10   : > { %p1407_p13 = scmp.lt.u32.totalorder %s1400_s30, %s2165_s1 }
  0x11   : > { %p1402_p10 = pneg %p1634_p8 }
  0x13   : > { %p1403_p11 = pnand %p1402_p10, %p1401_p9 }
  0x15   : > { %p1404_p12 = pneg %p1403_p11 }
  0x17   : > { %p1409_p0 = pnand %p1407_p13, %p1404_p12 }
  0x19   : > { %1412 = shalt.err (!%p1409_p0)
}
  0x1a   : > { %s1413_s9 = scalar_lea.vmem %s149_s23, 4096  ;;  %p1421_p4 = scmp.lt.s32.totalorder %s149_s23, %s149_s23 }
  0x1b   : > { %p1414_p2 = scmp.ne.s32.totalorder %s149_s23, %s1413_s9  ;;  %p1422_p1 = scmp.lt.s32.totalorder %s1413_s9, %s1413_s9 }
  0x1d   : > { %p1416_p3 = pnand %p1414_p2, %p1402_p10  ;;  %p1423_p5 = por %p1422_p1, %p1421_p4 }
  0x1f   : > { %p1417_p7 = pneg %p1416_p3 }
  0x21   : > { %p1424_p6 = pnand %p1423_p5, %p1417_p7 }
  0x23   : > { %1427 = shalt.err (!%p1424_p6)
}
  0x24   : > { %s1559_s10 = smov 256   ;;  %s1560_s11 = smov 16  }
  0x25   : > { %1298 = dma.hbm_to_vmem [thread:$0]  (!%p1634_p8), %s2165_s1, 4096, %s149_s23, [#allocation6], %s1559_s10, %s1559_s10, %s1560_s11  }
  0x26   : > { %p26_p9 = scmp.eq.s32.totalorder %s25_s27, 0  ;;  %p35_p10 = scmp.ne.s32.totalorder %s1552_s17, %s1548_s16 }
  0x27   : > { %p36_p1 = scmp.eq.s32.totalorder %s1556_s18, 0  ;;  %p1304_p4 = scmp.lt.s32.totalorder %s1556_s18, 2 }
  0x28   : > { %s1665_s14 = scalar_select %p26_p9, %s1552_s17, %s28_s26  }
  0x29   : > { %p37_p5 = por %p36_p1, %p35_p10  ;;  %s165_s15 = sand.u32 1, %s1552_s17  }
  0x2a   : > { %s1234_s22 = sshll.u32 %s165_s15, 7  ;;  %s1280_s28 = sshll.u32 %s1556_s18, 11 }
  0x2b   : > { %s1672_s5 = scalar_lea.hbm %s2164_s0, %s1280_s28  ;;  %s169_s23 = scalar_lea.vmem [#allocation2], %s1234_s22 }
  0x2c   : > { %s176_s24 = sshll.u32 %s169_s23, 4  ;;  %p1676_p6 = pnand %p1304_p4, %p37_p5  ;;  %s1674_s24 = int_to_ptr.vmem [resolvable:$true] %s176_s24 }
  0x2d   : > { %s1680_s18 = scalar_lea.sflag [#allocation3], %s165_s15  ;;  %s1428_s27 = scalar_lea.hbm %s1672_s5, 2048 }
  0x2e   : > { %p1429_p8 = scmp.ne.s32.totalorder %s1672_s5, %s1428_s27  ;;  %p1430_p11 = pneg %p1676_p6 }
  0x2f   : > { %s1433_s8 = scalar_lea.hbm %s2164_s0, 4096  ;;  %p1434_p0 = scmp.lt.u32.totalorder %s1672_s5, %s2164_s0 }
  0x30   : > { %p1431_p12 = pnand %p1430_p11, %p1429_p8  ;;  %p1435_p2 = scmp.lt.u32.totalorder %s1433_s8, %s1428_s27 }
  0x31   : > { %p1437_p7 = scmp.lt.u32.totalorder %s1428_s27, %s1672_s5 }
  0x32   : > { %p1432_p13 = pneg %p1431_p12  ;;  %p1436_p3 = por %p1435_p2, %p1434_p0 }
  0x34   : > { %p1438_p9 = por %p1437_p7, %p1436_p3 }
  0x36   : > { %p1439_p10 = pnand %p1438_p9, %p1432_p13 }
  0x38   : > { %1442 = shalt.err (!%p1439_p10)
}
  0x39   : > { %s1443_s11 = scalar_lea.vmem %s1674_s24, 2048  ;;  %s1561_s12 = smov [#allocation2]  }
  0x3a   : > { %p1444_p1 = scmp.ne.s32.totalorder %s1674_s24, %s1443_s11  ;;  %s1448_s13 = sshll.u32 %s1561_s12, 4  ;;  %s1449_s13 = int_to_ptr.vmem [resolvable:$false] %s1448_s13 }
  0x3b   : > { %s1450_s15 = scalar_lea.vmem %s1449_s13, 4096  ;;  %p1451_p8 = scmp.lt.s32.totalorder %s1674_s24, %s1449_s13 }
  0x3c   : > { %p1446_p4 = pnand %p1444_p1, %p1430_p11  ;;  %p1452_p12 = scmp.lt.s32.totalorder %s1450_s15, %s1443_s11 }
  0x3e   : > { %p1447_p5 = pneg %p1446_p4  ;;  %p1453_p0 = por %p1452_p12, %p1451_p8 }
  0x40   : > { %p1454_p2 = pnand %p1453_p0, %p1447_p5 }
  0x42   : > { %1457 = shalt.err (!%p1454_p2)
}
  0x43   : > { %s1562_s22 = smov 128   ;;  %s1563_s28 = smov 8  }
  0x44   : > { %1302 = dma.hbm_to_vmem [thread:$0]  (!%p1676_p6), %s1672_s5, 2048, %s1674_s24, %s1680_s18, %s1562_s22, %s1562_s22, %s1563_s28  }
  0x45   : > { %p2176_p11 = scmp.ne.s32.totalorder %s2173_s21, 0 }
  0x46   : > { %s190_s29 = sand.u32 (!%p2176_p11), 1, %s1548_s16   ;;  %p2177_p13 = scmp.ne.s32.totalorder (!%p2176_p11), %s2172_s20, 0 }
  0x47   : > { %188 = sbr.rel (%p2176_p11) target bundleno = 477 (0x1dd), region = 32  ;;  %s1238_s30 = sshll.u32 (!%p2176_p11), %s190_s29, 7 }
  0x48   : > { %s191_s23 = scalar_lea.sflag (!%p2176_p11), [#allocation3], %s190_s29  ;;  %s1711_s27 = scalar_lea.vmem (!%p2176_p11), [#allocation2], %s1238_s30 }
  0x4e   : > { %1527 = dma.done.wait (%p2177_p13), %s191_s23, 2048  }
  0x4f   : > { %1529 = vsyncadd (%p2177_p13), %s191_s23, 4294965248  ;;  %p2178_p3 = scmp.eq.s32.totalorder %s1613_s19, 0 }
  0x51   : > { %1531 = dma.done.wait (%p2178_p3), [#allocation6], 4096   ;;  %p2179_p6 = pmov %p2178_p3 }
  0x52   : > { %p2180_p7 = scmp.ne.s32.totalorder %s1613_s19, 0 }
  0x53   : > { %1533 = vsyncadd (%p2179_p6), [#allocation6], 4294963200  ;;  %v224_v0 = vlaneseq (!%p2180_p7)  ;;  %v1564_v1 = vmov (!%p2180_p7), 0.0  }
  0x54   : > { %223 = sbr.rel (%p2180_p7) target bundleno = 91 (0x5b), region = 44 }
  0x55   : > { %vm226_vm0 = vcmp.lt.s32.totalorder (!%p2180_p7), %v224_v0, 512 }
  0x56   : > { %228 = vst.msk [vmem:[#allocation7] sm:$0xf] (!%p2180_p7), %vm226_vm0, %v1564_v1  ;;  %229 = vst.msk [vmem:[#allocation8] sm:$0xf] (!%p2180_p7), %vm226_vm0, %v1564_v1 }
  0x5b PF: > { %v1352_v2 = vld [vmem:[#allocation5 + $0x4] ss:$16 sps:$4 sm:$0xff]   ;;  %v1354_v3 = vld [vmem:[#allocation5 + $0xc] ss:$16 sps:$4 sm:$0xff]   ;;  %v1565_v4 = vmov 0   ;;  %v288_v59 = vlaneseq  ;;  %s1273_s20 = sshll.u32 %s1613_s19, 7 }
  0x5c   : > { %500 = vmatprep.mubr.bf16.mxu0 %v1565_v4  ;;  %613 = vmatprep.mubr.bf16.mxu1 %v1565_v4  ;;  %v1356_v5 = vld [vmem:[#allocation5] ss:$16 sps:$4 sm:$0xff]   ;;  %v1357_v6 = vld [vmem:[#allocation5 + $0x8] ss:$16 sps:$4 sm:$0xff]   ;;  %v1358_v7 = vld [vmem:[#allocation5 + $0x24] ss:$16 sps:$4 sm:$0xff]   ;;  %v1764_v0 = vstv %s1273_s20 }
  0x5d   : > { %468 = vmatprep.subr.bf16.mxu0 %v1352_v2  ;;  %581 = vmatprep.subr.bf16.mxu1 %v1354_v3  ;;  %v1360_v8 = vld [vmem:[#allocation5 + $0x2c] ss:$16 sps:$4 sm:$0xff]   ;;  %v1362_v9 = vld [vmem:[#allocation5 + $0x20] ss:$16 sps:$4 sm:$0xff]   ;;  %v1363_v10 = vld [vmem:[#allocation5 + $0x28] ss:$16 sps:$4 sm:$0xff]  }
  0x5e   : > { %469 = vmatpush1.bf16.msra.mxu0 %v1356_v5  ;;  %582 = vmatpush1.bf16.msra.mxu1 %v1357_v6  ;;  %v1364_v11 = vld [vmem:[#allocation5 + $0x44] ss:$16 sps:$4 sm:$0xff]   ;;  %v1366_v12 = vld [vmem:[#allocation5 + $0x4c] ss:$16 sps:$4 sm:$0xff]   ;;  %v1368_v13 = vld [vmem:[#allocation5 + $0x40] ss:$16 sps:$4 sm:$0xff]  }
  0x5f   : > { %470 = vmatprep.subr.bf16.mxu0 %v1358_v7  ;;  %583 = vmatprep.subr.bf16.mxu1 %v1360_v8  ;;  %v1369_v14 = vld [vmem:[#allocation5 + $0x48] ss:$16 sps:$4 sm:$0xff]   ;;  %v1370_v15 = vld [vmem:[#allocation5 + $0x64] ss:$16 sps:$4 sm:$0xff]   ;;  %v1372_v16 = vld [vmem:[#allocation5 + $0x6c] ss:$16 sps:$4 sm:$0xff]  }
  0x60   : > { %v1374_v17 = vld [vmem:[#allocation5 + $0x60] ss:$16 sps:$4 sm:$0xff]   ;;  %v1375_v18 = vld [vmem:[#allocation5 + $0x68] ss:$16 sps:$4 sm:$0xff]   ;;  %v1376_v19 = vld [vmem:[#allocation5 + $0x84] ss:$16 sps:$4 sm:$0xff]  }
  0x61   : > { %v1378_v20 = vld [vmem:[#allocation5 + $0x8c] ss:$16 sps:$4 sm:$0xff]   ;;  %v1380_v21 = vld [vmem:[#allocation5 + $0x80] ss:$16 sps:$4 sm:$0xff]   ;;  %v1381_v22 = vld [vmem:[#allocation5 + $0x88] ss:$16 sps:$4 sm:$0xff]  }
  0x62   : > { %471 = vmatpush1.bf16.msra.mxu0 %v1362_v9  ;;  %584 = vmatpush1.bf16.msra.mxu1 %v1363_v10  ;;  %v1382_v23 = vld [vmem:[#allocation5 + $0xa4] ss:$16 sps:$4 sm:$0xff]   ;;  %v1384_v24 = vld [vmem:[#allocation5 + $0xac] ss:$16 sps:$4 sm:$0xff]   ;;  %v1386_v25 = vld [vmem:[#allocation5 + $0xa0] ss:$16 sps:$4 sm:$0xff]  }
  0x63   : > { %472 = vmatprep.subr.bf16.mxu0 %v1364_v11  ;;  %585 = vmatprep.subr.bf16.mxu1 %v1366_v12  ;;  %v1387_v26 = vld [vmem:[#allocation5 + $0xa8] ss:$16 sps:$4 sm:$0xff]   ;;  %v1388_v27 = vld [vmem:[#allocation5 + $0xc4] ss:$16 sps:$4 sm:$0xff]   ;;  %v1390_v28 = vld [vmem:[#allocation5 + $0xcc] ss:$16 sps:$4 sm:$0xff]  }
  0x64   : > { %v1392_v29 = vld [vmem:[#allocation5 + $0xc0] ss:$16 sps:$4 sm:$0xff]   ;;  %v1393_v30 = vld [vmem:[#allocation5 + $0xc8] ss:$16 sps:$4 sm:$0xff]   ;;  %v1394_v31 = vld [vmem:[#allocation5 + $0xe4] ss:$16 sps:$4 sm:$0xff]  }
  0x65   : > { %v1396_v32 = vld [vmem:[#allocation5 + $0xec] ss:$16 sps:$4 sm:$0xff]   ;;  %v1398_v33 = vld [vmem:[#allocation5 + $0xe0] ss:$16 sps:$4 sm:$0xff]   ;;  %v1399_v34 = vld [vmem:[#allocation5 + $0xe8] ss:$16 sps:$4 sm:$0xff]  }
  0x66   : > { %473 = vmatpush1.bf16.msra.mxu0 %v1368_v13  ;;  %586 = vmatpush1.bf16.msra.mxu1 %v1369_v14  ;;  %v230_v35 = vld [vmem:[%s1711_s27] sm:$0xff]  ;;  %v231_v36 = vld [vmem:[%s1711_s27 + $0x8] sm:$0xff]  ;;  %v232_v38 = vld [vmem:[%s1711_s27 + $0x10] sm:$0xff]  ;;  %v1756_v60 = vshrl.u32 %v288_v59, 7  ;;  %s1567_s24 = smov [#allocation7]   ;;  %p1306_p9 = scmp.eq.s32.totalorder %s1613_s19, 1 }
  0x67   : > { %474 = vmatprep.subr.bf16.mxu0 %v1370_v15  ;;  %587 = vmatprep.subr.bf16.mxu1 %v1372_v16  ;;  %v246_v37 = vpack.c.bf16 %v231_v36, %v230_v35  ;;  %v233_v39 = vld [vmem:[%s1711_s27 + $0x18] sm:$0xff]  ;;  %v234_v41 = vld [vmem:[%s1711_s27 + $0x20] sm:$0xff]  ;;  %v235_v42 = vld [vmem:[%s1711_s27 + $0x28] sm:$0xff]  ;;  %s1148_s26 = sshll.u32 %s1567_s24, 4  ;;  %s1568_s18 = smov [#allocation8]   ;;  %s1149_s26 = int_to_ptr.vmem [resolvable:$true] %s1148_s26 }
  0x68   : > { %v247_v40 = vpack.c.bf16 %v233_v39, %v232_v38  ;;  %v248_v43 = vpack.c.bf16 %v235_v42, %v234_v41  ;;  %v236_v44 = vld [vmem:[%s1711_s27 + $0x30] sm:$0xff]  ;;  %v237_v45 = vld [vmem:[%s1711_s27 + $0x38] sm:$0xff]  ;;  %v238_v47 = vld [vmem:[%s1711_s27 + $0x40] sm:$0xff]  ;;  %v290_v61 = vsub.s32 0, %v1756_v60  ;;  %v696_v62 = vadd.s32 8, %v1756_v60  ;;  %s1159_s6 = sshll.u32 %s1568_s18, 4  ;;  %p1465_p5 = scmp.lt.s32.totalorder %s1149_s26, %s1149_s26  ;;  %s2098_s6 = int_to_ptr.vmem [resolvable:$true] %s1159_s6 }
  0x69   : > { %v249_v46 = vpack.c.bf16 %v237_v45, %v236_v44  ;;  %v239_v48 = vld [vmem:[%s1711_s27 + $0x48] sm:$0xff]  ;;  %v240_v50 = vld [vmem:[%s1711_s27 + $0x50] sm:$0xff]  ;;  %v241_v51 = vld [vmem:[%s1711_s27 + $0x58] sm:$0xff]  ;;  %v298_v1 = vsub.s32 2, %v1756_v60  ;;  %v697_v2 = vadd.s32 16, %v1756_v60  ;;  %v294_v3 = vsub.s32 1, %v1756_v60 }
  0x6a   : > { %475 = vmatpush1.bf16.msra.mxu0 %v1374_v17  ;;  %588 = vmatpush1.bf16.msra.mxu1 %v1375_v18  ;;  %v250_v49 = vpack.c.bf16 %v239_v48, %v238_v47  ;;  %v251_v52 = vpack.c.bf16 %v241_v51, %v240_v50  ;;  %v242_v53 = vld [vmem:[%s1711_s27 + $0x60] sm:$0xff]  ;;  %v243_v54 = vld [vmem:[%s1711_s27 + $0x68] sm:$0xff]  ;;  %v244_v56 = vld [vmem:[%s1711_s27 + $0x70] sm:$0xff]  ;;  %v713_v6 = vadd.s32 %v1764_v0, %v1756_v60  ;;  %v698_v8 = vadd.s32 24, %v1756_v60  ;;  %s1458_s7 = scalar_lea.vmem %s1149_s26, 64 }
  0x6b   : > { %476 = vmatprep.subr.bf16.mxu0 %v1376_v19  ;;  %589 = vmatprep.subr.bf16.mxu1 %v1378_v20  ;;  %v252_v55 = vpack.c.bf16 %v243_v54, %v242_v53  ;;  %v245_v57 = vld [vmem:[%s1711_s27 + $0x78] sm:$0xff]  ;;  %v286_v63 = vld [vmem:[%s2166_s2] sm:$0xf]  ;;  %v1775_v7 = vadd.s32 %v1764_v0, %v696_v62  ;;  %v699_v9 = vadd.s32 32, %v1756_v60  ;;  %v700_v10 = vadd.s32 40, %v1756_v60  ;;  %p1459_p10 = scmp.ne.s32.totalorder %s1149_s26, %s1458_s7  ;;  %p1466_p8 = scmp.lt.s32.totalorder %s1458_s7, %s1458_s7 }
  0x6c   : > { %v253_v58 = vpack.c.bf16 %v245_v57, %v244_v56  ;;  %v1770_v5 = vrot.slane %v286_v63, %v290_v61  ;;  %v701_v11 = vadd.s32 48, %v1756_v60  ;;  %v702_v12 = vadd.s32 56, %v1756_v60 }
  0x6d   : > { %v1782_v13 = vrot.slane %v286_v63, %v298_v1  ;;  %v1785_v14 = vadd.s32 %v1764_v0, %v697_v2  ;;  %v703_v15 = vadd.s32 64, %v1756_v60  ;;  %v704_v16 = vadd.s32 72, %v1756_v60  ;;  %p1460_p1 = pnand %p1459_p10, %p1306_p9  ;;  %p1467_p12 = por %p1466_p8, %p1465_p5 }
  0x6e   : > { %477 = vmatpush1.bf16.msra.mxu0 %v1380_v21  ;;  %590 = vmatpush1.bf16.msra.mxu1 %v1381_v22  ;;  %v1789_v17 = vrot.slane %v286_v63, %v294_v3  ;;  %v705_v19 = vadd.s32 80, %v1756_v60  ;;  %v706_v20 = vadd.s32 88, %v1756_v60  ;;  %vm729_vm1 = vcmp.lt.s32.totalorder %v713_v6, 200 }
  0x6f   : > { %478 = vmatprep.subr.bf16.mxu0 %v1382_v23  ;;  %591 = vmatprep.subr.bf16.mxu1 %v1384_v24  ;;  %vm730_vm2 = vcmp.lt.s32.totalorder %v1775_v7, 200  ;;  %v1797_v21 = vadd.s32 %v1764_v0, %v698_v8  ;;  %v707_v22 = vadd.s32 96, %v1756_v60  ;;  %v1801_v23 = vadd.s32 %v1764_v0, %v699_v9  ;;  %p1461_p4 = pneg %p1460_p1 }
  0x70   : > { %v1804_v24 = vadd.s32 %v1764_v0, %v700_v10  ;;  %vm731_vm3 = vcmp.lt.s32.totalorder %v1785_v14, 200  ;;  %v1827_v38 = vadd.s32 %v1764_v0, %v706_v20  ;;  %v710_v44 = vadd.s32 120, %v1756_v60 }
  0x71   : > { %vm732_vm4 = vcmp.lt.s32.totalorder %v1797_v21, 200  ;;  %vm733_vm5 = vcmp.lt.s32.totalorder %v1801_v23, 200  ;;  %p1468_p0 = pnand %p1467_p12, %p1461_p4 }
  0x72   : > { %479 = vmatpush1.bf16.msra.mxu0 %v1386_v25  ;;  %592 = vmatpush1.bf16.msra.mxu1 %v1387_v26  ;;  %v1807_v25 = vadd.s32 %v1764_v0, %v701_v11  ;;  %v1810_v26 = vadd.s32 %v1764_v0, %v702_v12  ;;  %vm734_vm6 = vcmp.lt.s32.totalorder %v1804_v24, 200  ;;  %vm740_vm12 = vcmp.lt.s32.totalorder %v1827_v38, 200 }
  0x73   : > { %480 = vmatprep.subr.bf16.mxu0 %v1388_v27  ;;  %593 = vmatprep.subr.bf16.mxu1 %v1390_v28 }
  0x74   : > { %vm735_vm7 = vcmp.lt.s32.totalorder %v1807_v25, 200  ;;  %vm736_vm8 = vcmp.lt.s32.totalorder %v1810_v26, 200 }
  0x76   : > { %481 = vmatpush1.bf16.msra.mxu0 %v1392_v29  ;;  %594 = vmatpush1.bf16.msra.mxu1 %v1393_v30  ;;  %v1814_v29 = vadd.s32 %v1764_v0, %v703_v15  ;;  %v1817_v30 = vadd.s32 %v1764_v0, %v704_v16 }
  0x77   : > { %482 = vmatprep.subr.bf16.mxu0 %v1394_v31  ;;  %595 = vmatprep.subr.bf16.mxu1 %v1396_v32  ;;  %v708_v31 = vadd.s32 104, %v1756_v60  ;;  %v709_v32 = vadd.s32 112, %v1756_v60 }
  0x78   : > { %vm737_vm9 = vcmp.lt.s32.totalorder %v1814_v29, 200  ;;  %vm738_vm10 = vcmp.lt.s32.totalorder %v1817_v30, 200 }
  0x79   : > { %v1840_v53 = vadd.s32 %v1764_v0, %v708_v31  ;;  %v1843_v54 = vadd.s32 %v1764_v0, %v709_v32 }
  0x7a   : > { %483 = vmatpush1.bf16.msra.mxu0 %v1398_v33  ;;  %596 = vmatpush1.bf16.msra.mxu1 %v1399_v34 }
  0x7b   : > { %vm742_vm14 = vcmp.lt.s32.totalorder %v1840_v53, 200  ;;  %vm743_vm15 = vcmp.lt.s32.totalorder %v1843_v54, 200 }
  0x7d   : > { %501 = vmatmul.mubr.bf16.vlgmr.msra.gmra.mrb[0].mxu0 %v246_v37  ;;  %614 = vmatmul.mubr.bf16.vlgmr.msra.gmra.mrb[0].mxu1 %v246_v37  ;;  %v1824_v37 = vadd.s32 %v1764_v0, %v705_v19 }
  0x7e   : > { %510 = vmatprep.mubr.bf16.mxu0 %v1565_v4  ;;  %623 = vmatprep.mubr.bf16.mxu1 %v1565_v4 }
  0x7f   : > { %vm739_vm11 = vcmp.lt.s32.totalorder %v1824_v37, 200 }
  0x85   : > { %511 = vmatmul.mubr.bf16.gmra.mrb[4].mxu0 %v247_v40  ;;  %624 = vmatmul.mubr.bf16.gmra.mrb[4].mxu1 %v247_v40 }
  0x86   : > { %520 = vmatprep.mubr.bf16.mxu0 %v1565_v4  ;;  %633 = vmatprep.mubr.bf16.mxu1 %v1565_v4 }
  0x8d   : > { %521 = vmatmul.mubr.bf16.gmra.mrb[8].mxu0 %v248_v43  ;;  %634 = vmatmul.mubr.bf16.gmra.mrb[8].mxu1 %v248_v43  ;;  %v1832_v43 = vadd.s32 %v1764_v0, %v707_v22 }
  0x8e   : > { %530 = vmatprep.mubr.bf16.mxu0 %v1565_v4  ;;  %643 = vmatprep.mubr.bf16.mxu1 %v1565_v4 }
  0x8f   : > { %vm741_vm13 = vcmp.lt.s32.totalorder %v1832_v43, 200 }
  0x95   : > { %531 = vmatmul.mubr.bf16.gmra.mrb[12].mxu0 %v249_v46  ;;  %644 = vmatmul.mubr.bf16.gmra.mrb[12].mxu1 %v249_v46 }
  0x96   : > { %540 = vmatprep.mubr.bf16.mxu0 %v1565_v4  ;;  %653 = vmatprep.mubr.bf16.mxu1 %v1565_v4 }
  0x9d   : > { %541 = vmatmul.mubr.bf16.gmra.mrb[16].mxu0 %v250_v49  ;;  %654 = vmatmul.mubr.bf16.gmra.mrb[16].mxu1 %v250_v49 }
  0x9e   : > { %550 = vmatprep.mubr.bf16.mxu0 %v1565_v4  ;;  %663 = vmatprep.mubr.bf16.mxu1 %v1565_v4 }
  0xa5   : > { %551 = vmatmul.mubr.bf16.gmra.mrb[20].mxu0 %v251_v52  ;;  %664 = vmatmul.mubr.bf16.gmra.mrb[20].mxu1 %v251_v52 }
  0xa6   : > { %560 = vmatprep.mubr.bf16.mxu0 %v1565_v4  ;;  %673 = vmatprep.mubr.bf16.mxu1 %v1565_v4 }
  0xad   : > { %561 = vmatmul.mubr.bf16.gmra.mrb[24].mxu0 %v252_v55  ;;  %674 = vmatmul.mubr.bf16.gmra.mrb[24].mxu1 %v252_v55 }
  0xae   : > { %570 = vmatprep.mubr.bf16.mxu0 %v1565_v4  ;;  %683 = vmatprep.mubr.bf16.mxu1 %v1565_v4  ;;  %v302_v4 = vsub.s32 3, %v1756_v60 }
  0xb0   : > { %v1791_v18 = vrot.slane %v286_v63, %v302_v4  ;;  %v1855_v4 = vadd.s32 %v1764_v0, %v710_v44 }
  0xb2   : > { %vm744_vm0 = vcmp.lt.s32.totalorder %v1855_v4, 200 }
  0xb5   : > { %571 = vmatmul.mubr.bf16.gmra.mrb[28].mxu0 %v253_v58  ;;  %684 = vmatmul.mubr.bf16.gmra.mrb[28].mxu1 %v253_v58 }
 0x150   : > { %v502_v27 = vpop.f32.mrb[0].mxu0  ;;  %v615_v28 = vpop.f32.mrb[0].mxu1 }
 0x151   : > { %v503_v33 = vadd.f32 %v502_v27, %v1770_v5  ;;  %v616_v34 = vadd.f32 %v615_v28, %v1782_v13  ;;  %v504_v35 = vpop.f32.mrb[1].mxu0  ;;  %v617_v36 = vpop.f32.mrb[1].mxu1 }
 0x152   : > { %v505_v39 = vadd.f32 %v504_v35, %v1789_v17  ;;  %v618_v40 = vadd.f32 %v617_v36, %v1791_v18  ;;  %v506_v41 = vpop.f32.mrb[2].mxu0  ;;  %v619_v42 = vpop.f32.mrb[2].mxu1 }
 0x153   : > { %v777_v45 = vsel %vm729_vm1, %v503_v33, 0.0  ;;  %v779_v46 = vsel %vm729_vm1, %v616_v34, 0.0  ;;  %v507_v47 = vadd.f32 %v506_v41, %v1770_v5  ;;  %v620_v48 = vadd.f32 %v619_v42, %v1782_v13  ;;  %v508_v49 = vpop.f32.mrb[3].mxu0  ;;  %v621_v50 = vpop.f32.mrb[3].mxu1 }
 0x154   : > { %v962_v51 = vmul.f32 %v777_v45, %v777_v45  ;;  %v964_v52 = vmul.f32 %v779_v46, %v779_v46  ;;  %v778_v55 = vsel %vm729_vm1, %v505_v39, 0.0  ;;  %v780_v56 = vsel %vm729_vm1, %v618_v40, 0.0 }
 0x155   : > { %v781_v57 = vsel %vm730_vm2, %v507_v47, 0.0  ;;  %v783_v58 = vsel %vm730_vm2, %v620_v48, 0.0  ;;  %v509_v2 = vadd.f32 %v508_v49, %v1789_v17  ;;  %v622_v3 = vadd.f32 %v621_v50, %v1791_v18 }
 0x156   : > { %v842_v61 = vadd.f32 %v781_v57, %v777_v45  ;;  %v966_v62 = vmul.f32 %v781_v57, %v781_v57  ;;  %v884_v63 = vadd.f32 %v783_v58, %v779_v46  ;;  %v968_v1 = vmul.f32 %v783_v58, %v783_v58 }
 0x157   : > { %v963_v6 = vmul.f32 %v778_v55, %v778_v55  ;;  %v965_v8 = vmul.f32 %v780_v56, %v780_v56  ;;  %v782_v15 = vsel %vm730_vm2, %v509_v2, 0.0  ;;  %v784_v16 = vsel %vm730_vm2, %v622_v3, 0.0 }
 0x158   : > { %v1026_v9 = vadd.f32 %v966_v62, %v962_v51  ;;  %v1068_v10 = vadd.f32 %v968_v1, %v964_v52  ;;  %v512_v11 = vpop.f32.mrb[4].mxu0  ;;  %v625_v12 = vpop.f32.mrb[4].mxu1  ;;  %v863_v27 = vadd.f32 %v782_v15, %v778_v55  ;;  %v967_v28 = vmul.f32 %v782_v15, %v782_v15 }
 0x159   : > { %v513_v19 = vadd.f32 %v512_v11, %v1770_v5  ;;  %v626_v20 = vadd.f32 %v625_v12, %v1782_v13  ;;  %v514_v0 = vpop.f32.mrb[5].mxu0  ;;  %v627_v22 = vpop.f32.mrb[5].mxu1  ;;  %v905_v31 = vadd.f32 %v784_v16, %v780_v56  ;;  %v969_v32 = vmul.f32 %v784_v16, %v784_v16 }
 0x15a   : > { %v516_v33 = vpop.f32.mrb[6].mxu0  ;;  %v629_v34 = vpop.f32.mrb[6].mxu1  ;;  %v515_v7 = vadd.f32 %v514_v0, %v1789_v17  ;;  %v628_v39 = vadd.f32 %v627_v22, %v1791_v18  ;;  %v1047_v42 = vadd.f32 %v967_v28, %v963_v6  ;;  %v1566_v6 = vmov 1966171168  }
 0x15b   : > { %v785_v35 = vsel %vm731_vm3, %v513_v19, 0.0  ;;  %v787_v36 = vsel %vm731_vm3, %v626_v20, 0.0  ;;  %v518_v40 = vpop.f32.mrb[7].mxu0  ;;  %v631_v41 = vpop.f32.mrb[7].mxu1  ;;  %v1089_v44 = vadd.f32 %v969_v32, %v965_v8  ;;  %v517_v62 = vadd.f32 %v516_v33, %v1770_v5 }
 0x15c   : > { %v843_v45 = vadd.f32 %v842_v61, %v785_v35  ;;  %v970_v46 = vmul.f32 %v785_v35, %v785_v35  ;;  %v885_v47 = vadd.f32 %v884_v63, %v787_v36  ;;  %v972_v48 = vmul.f32 %v787_v36, %v787_v36 }
 0x15d   : > { %v786_v49 = vsel %vm731_vm3, %v515_v7, 0.0  ;;  %v788_v50 = vsel %vm731_vm3, %v628_v39, 0.0  ;;  %v630_v1 = vadd.f32 %v629_v34, %v1782_v13  ;;  %v519_v63 = vadd.f32 %v518_v40, %v1789_v17 }
 0x15e   : > { %v1027_v51 = vadd.f32 %v1026_v9, %v970_v46  ;;  %v864_v52 = vadd.f32 %v863_v27, %v786_v49  ;;  %v971_v55 = vmul.f32 %v786_v49, %v786_v49  ;;  %v906_v56 = vadd.f32 %v905_v31, %v788_v50 }
 0x15f   : > { %v1069_v57 = vadd.f32 %v1068_v10, %v972_v48  ;;  %v973_v58 = vmul.f32 %v788_v50, %v788_v50  ;;  %v632_v2 = vadd.f32 %v631_v41, %v1791_v18  ;;  %v1879_v8 = vunpack.c.l.s4 %v1566_v6 }
 0x160   : > { %v1048_v61 = vadd.f32 %v1047_v42, %v971_v55  ;;  %v522_v3 = vpop.f32.mrb[8].mxu0  ;;  %v635_v14 = vpop.f32.mrb[8].mxu1  ;;  %v789_v10 = vsel %vm732_vm4, %v517_v62, 0.0  ;;  %v791_v11 = vsel %vm732_vm4, %v630_v1, 0.0  ;;  %v790_v31 = vsel %vm732_vm4, %v519_v63, 0.0 }
 0x161   : > { %v1090_v9 = vadd.f32 %v1089_v44, %v973_v58  ;;  %v523_v12 = vadd.f32 %v522_v3, %v1770_v5  ;;  %v524_v15 = vpop.f32.mrb[9].mxu0  ;;  %v637_v16 = vpop.f32.mrb[9].mxu1  ;;  %v844_v19 = vadd.f32 %v843_v45, %v789_v10  ;;  %v974_v20 = vmul.f32 %v789_v10, %v789_v10 }
 0x162   : > { %v886_v0 = vadd.f32 %v885_v47, %v791_v11  ;;  %v976_v22 = vmul.f32 %v791_v11, %v791_v11  ;;  %v526_v27 = vpop.f32.mrb[10].mxu0  ;;  %v639_v28 = vpop.f32.mrb[10].mxu1  ;;  %v792_v32 = vsel %vm732_vm4, %v632_v2, 0.0  ;;  %v636_v34 = vadd.f32 %v635_v14, %v1782_v13 }
 0x163   : > { %v793_v33 = vsel %vm733_vm5, %v523_v12, 0.0  ;;  %v528_v35 = vpop.f32.mrb[11].mxu0  ;;  %v641_v36 = vpop.f32.mrb[11].mxu1  ;;  %v1028_v7 = vadd.f32 %v1027_v51, %v974_v20  ;;  %v865_v40 = vadd.f32 %v864_v52, %v790_v31  ;;  %v975_v41 = vmul.f32 %v790_v31, %v790_v31 }
 0x164   : > { %v1070_v39 = vadd.f32 %v1069_v57, %v976_v22  ;;  %v907_v42 = vadd.f32 %v906_v56, %v792_v32  ;;  %v977_v44 = vmul.f32 %v792_v32, %v792_v32  ;;  %v845_v45 = vadd.f32 %v844_v19, %v793_v33 }
 0x165   : > { %v978_v46 = vmul.f32 %v793_v33, %v793_v33  ;;  %v1049_v47 = vadd.f32 %v1048_v61, %v975_v41  ;;  %v795_v21 = vsel %vm733_vm5, %v636_v34, 0.0  ;;  %v525_v48 = vadd.f32 %v524_v15, %v1789_v17 }
 0x166   : > { %v638_v49 = vadd.f32 %v637_v16, %v1791_v18  ;;  %v1091_v50 = vadd.f32 %v1090_v9, %v977_v44  ;;  %v887_v51 = vadd.f32 %v886_v0, %v795_v21  ;;  %v980_v57 = vmul.f32 %v795_v21, %v795_v21 }
 0x167   : > { %v1029_v55 = vadd.f32 %v1028_v7, %v978_v46  ;;  %v794_v52 = vsel %vm733_vm5, %v525_v48, 0.0  ;;  %v527_v58 = vadd.f32 %v526_v27, %v1770_v5  ;;  %v640_v62 = vadd.f32 %v639_v28, %v1782_v13 }
 0x168   : > { %v796_v56 = vsel %vm733_vm5, %v638_v49, 0.0  ;;  %v532_v1 = vpop.f32.mrb[12].mxu0  ;;  %v645_v61 = vpop.f32.mrb[12].mxu1  ;;  %v1071_v63 = vadd.f32 %v1070_v39, %v980_v57  ;;  %v866_v2 = vadd.f32 %v865_v40, %v794_v52  ;;  %v979_v3 = vmul.f32 %v794_v52, %v794_v52 }
 0x169   : > { %v908_v14 = vadd.f32 %v907_v42, %v796_v56  ;;  %v534_v6 = vpop.f32.mrb[13].mxu0  ;;  %v647_v9 = vpop.f32.mrb[13].mxu1  ;;  %v981_v10 = vmul.f32 %v796_v56, %v796_v56  ;;  %v797_v11 = vsel %vm734_vm6, %v527_v58, 0.0  ;;  %v799_v23 = vsel %vm734_vm6, %v640_v62, 0.0 }
 0x16a   : > { %v529_v12 = vadd.f32 %v528_v35, %v1789_v17  ;;  %v536_v15 = vpop.f32.mrb[14].mxu0  ;;  %v649_v16 = vpop.f32.mrb[14].mxu1  ;;  %v1050_v19 = vadd.f32 %v1049_v47, %v979_v3  ;;  %v846_v20 = vadd.f32 %v845_v45, %v797_v11  ;;  %v982_v0 = vmul.f32 %v797_v11, %v797_v11 }
 0x16b   : > { %v888_v22 = vadd.f32 %v887_v51, %v799_v23  ;;  %v538_v27 = vpop.f32.mrb[15].mxu0  ;;  %v651_v28 = vpop.f32.mrb[15].mxu1  ;;  %v1092_v31 = vadd.f32 %v1091_v50, %v981_v10  ;;  %v984_v32 = vmul.f32 %v799_v23, %v799_v23  ;;  %v642_v34 = vadd.f32 %v641_v36, %v1791_v18 }
 0x16c   : > { %v798_v33 = vsel %vm734_vm6, %v529_v12, 0.0  ;;  %v1030_v7 = vadd.f32 %v1029_v55, %v982_v0  ;;  %v533_v40 = vadd.f32 %v532_v1, %v1770_v5  ;;  %v646_v44 = vadd.f32 %v645_v61, %v1782_v13 }
 0x16d   : > { %v867_v39 = vadd.f32 %v866_v2, %v798_v33  ;;  %v983_v35 = vmul.f32 %v798_v33, %v798_v33  ;;  %v1072_v41 = vadd.f32 %v1071_v63, %v984_v32  ;;  %v800_v42 = vsel %vm734_vm6, %v642_v34, 0.0 }
 0x16e   : > { %v535_v45 = vadd.f32 %v534_v6, %v1789_v17  ;;  %v909_v47 = vadd.f32 %v908_v14, %v800_v42  ;;  %v985_v21 = vmul.f32 %v800_v42, %v800_v42  ;;  %v801_v48 = vsel %vm735_vm7, %v533_v40, 0.0 }
 0x16f   : > { %v1051_v46 = vadd.f32 %v1050_v19, %v983_v35  ;;  %v847_v36 = vadd.f32 %v846_v20, %v801_v48  ;;  %v986_v49 = vmul.f32 %v801_v48, %v801_v48  ;;  %v803_v50 = vsel %vm735_vm7, %v646_v44, 0.0 }
 0x170   : > { %v802_v55 = vsel %vm735_vm7, %v535_v45, 0.0  ;;  %v542_v24 = vpop.f32.mrb[16].mxu0  ;;  %v655_v51 = vpop.f32.mrb[16].mxu1  ;;  %v1093_v57 = vadd.f32 %v1092_v31, %v985_v21  ;;  %v889_v52 = vadd.f32 %v888_v22, %v803_v50  ;;  %v988_v56 = vmul.f32 %v803_v50, %v803_v50 }
 0x171   : > { %v868_v58 = vadd.f32 %v867_v39, %v802_v55  ;;  %v544_v62 = vpop.f32.mrb[17].mxu0  ;;  %v657_v1 = vpop.f32.mrb[17].mxu1  ;;  %v1031_v61 = vadd.f32 %v1030_v7, %v986_v49  ;;  %v987_v63 = vmul.f32 %v802_v55, %v802_v55  ;;  %v648_v2 = vadd.f32 %v647_v9, %v1791_v18 }
 0x172   : > { %v537_v3 = vadd.f32 %v536_v15, %v1770_v5  ;;  %v546_v14 = vpop.f32.mrb[18].mxu0  ;;  %v659_v6 = vpop.f32.mrb[18].mxu1  ;;  %v1073_v10 = vadd.f32 %v1072_v41, %v988_v56  ;;  %v650_v11 = vadd.f32 %v649_v16, %v1782_v13  ;;  %v539_v23 = vadd.f32 %v538_v27, %v1789_v17 }
 0x173   : > { %v652_v12 = vadd.f32 %v651_v28, %v1791_v18  ;;  %v548_v19 = vpop.f32.mrb[19].mxu0  ;;  %v1931_v20 = vpop.f32.mrb[19].mxu1  ;;  %v1052_v0 = vadd.f32 %v1051_v46, %v987_v63  ;;  %v804_v9 = vsel %vm735_vm7, %v648_v2, 0.0  ;;  %v543_v22 = vadd.f32 %v542_v24, %v1770_v5 }
 0x174   : > { %v805_v15 = vsel %vm736_vm8, %v537_v3, 0.0  ;;  %v910_v31 = vadd.f32 %v909_v47, %v804_v9  ;;  %v989_v16 = vmul.f32 %v804_v9, %v804_v9  ;;  %v807_v28 = vsel %vm736_vm8, %v650_v11, 0.0 }
 0x175   : > { %v848_v32 = vadd.f32 %v847_v36, %v805_v15  ;;  %v990_v27 = vmul.f32 %v805_v15, %v805_v15  ;;  %v806_v33 = vsel %vm736_vm8, %v539_v23, 0.0  ;;  %v808_v34 = vsel %vm736_vm8, %v652_v12, 0.0 }
 0x176   : > { %v809_v25 = vsel %vm737_vm9, %v543_v22, 0.0  ;;  %v1094_v7 = vadd.f32 %v1093_v57, %v989_v16  ;;  %v890_v35 = vadd.f32 %v889_v52, %v807_v28  ;;  %v992_v40 = vmul.f32 %v807_v28, %v807_v28 }
 0x177   : > { %v1032_v39 = vadd.f32 %v1031_v61, %v990_v27  ;;  %v869_v41 = vadd.f32 %v868_v58, %v806_v33  ;;  %v991_v42 = vmul.f32 %v806_v33, %v806_v33  ;;  %v911_v44 = vadd.f32 %v910_v31, %v808_v34 }
 0x178   : > { %v993_v45 = vmul.f32 %v808_v34, %v808_v34  ;;  %v552_v46 = vpop.f32.mrb[20].mxu0  ;;  %v665_v47 = vpop.f32.mrb[20].mxu1  ;;  %v1074_v21 = vadd.f32 %v1073_v10, %v992_v40  ;;  %v849_v48 = vadd.f32 %v848_v32, %v809_v25  ;;  %v994_v36 = vmul.f32 %v809_v25, %v809_v25 }
 0x179   : > { %v656_v26 = vadd.f32 %v655_v51, %v1782_v13  ;;  %v554_v49 = vpop.f32.mrb[21].mxu0  ;;  %v1948_v50 = vpop.f32.mrb[21].mxu1  ;;  %v1053_v55 = vadd.f32 %v1052_v0, %v991_v42  ;;  %v545_v57 = vadd.f32 %v544_v62, %v1789_v17  ;;  %v658_v52 = vadd.f32 %v657_v1, %v1791_v18 }
 0x17a   : > { %v1095_v24 = vadd.f32 %v1094_v7, %v993_v45  ;;  %v556_v56 = vpop.f32.mrb[22].mxu0  ;;  %v669_v58 = vpop.f32.mrb[22].mxu1  ;;  %v1033_v61 = vadd.f32 %v1032_v39, %v994_v36  ;;  %v547_v2 = vadd.f32 %v546_v14, %v1770_v5  ;;  %v660_v3 = vadd.f32 %v659_v6, %v1782_v13 }
 0x17b   : > { %v811_v63 = vsel %vm737_vm9, %v656_v26, 0.0  ;;  %v558_v51 = vpop.f32.mrb[23].mxu0  ;;  %v671_v10 = vpop.f32.mrb[23].mxu1  ;;  %v810_v12 = vsel %vm737_vm9, %v545_v57, 0.0  ;;  %v812_v62 = vsel %vm737_vm9, %v658_v52, 0.0  ;;  %v549_v31 = vadd.f32 %v548_v19, %v1789_v17 }
 0x17c   : > { %v891_v11 = vadd.f32 %v890_v35, %v811_v63  ;;  %v996_v23 = vmul.f32 %v811_v63, %v811_v63  ;;  %v870_v1 = vadd.f32 %v869_v41, %v810_v12  ;;  %v995_v0 = vmul.f32 %v810_v12, %v810_v12 }
 0x17d   : > { %v912_v9 = vadd.f32 %v911_v44, %v812_v62  ;;  %v997_v15 = vmul.f32 %v812_v62, %v812_v62  ;;  %v813_v14 = vsel %vm738_vm10, %v547_v2, 0.0  ;;  %v815_v6 = vsel %vm738_vm10, %v660_v3, 0.0 }
 0x17e   : > { %v1075_v22 = vadd.f32 %v1074_v21, %v996_v23  ;;  %v1054_v16 = vadd.f32 %v1053_v55, %v995_v0  ;;  %v850_v27 = vadd.f32 %v849_v48, %v813_v14  ;;  %v998_v29 = vmul.f32 %v813_v14, %v813_v14 }
 0x17f   : > { %v1096_v32 = vadd.f32 %v1095_v24, %v997_v15  ;;  %v892_v28 = vadd.f32 %v891_v11, %v815_v6  ;;  %v1000_v33 = vmul.f32 %v815_v6, %v815_v6  ;;  %v814_v34 = vsel %vm738_vm10, %v549_v31, 0.0 }
 0x180   : > { %v662_v25 = vadd.f32 %v1931_v20, %v1791_v18  ;;  %v562_v7 = vpop.f32.mrb[24].mxu0  ;;  %v1971_v39 = vpop.f32.mrb[24].mxu1  ;;  %v1034_v35 = vadd.f32 %v1033_v61, %v998_v29  ;;  %v871_v40 = vadd.f32 %v870_v1, %v814_v34  ;;  %v999_v19 = vmul.f32 %v814_v34, %v814_v34 }
 0x181   : > { %v553_v41 = vadd.f32 %v552_v46, %v1770_v5  ;;  %v1974_v42 = vpop.f32.mrb[25].mxu0  ;;  %v1976_v44 = vpop.f32.mrb[25].mxu1  ;;  %v1076_v45 = vadd.f32 %v1075_v22, %v1000_v33  ;;  %v666_v48 = vadd.f32 %v665_v47, %v1782_v13  ;;  %v555_v20 = vadd.f32 %v554_v49, %v1789_v17 }
 0x182   : > { %v816_v21 = vsel %vm738_vm10, %v662_v25, 0.0  ;;  %v1982_v36 = vpop.f32.mrb[26].mxu0  ;;  %v1984_v26 = vpop.f32.mrb[26].mxu1  ;;  %v1055_v55 = vadd.f32 %v1054_v16, %v999_v19  ;;  %v668_v1 = vadd.f32 %v1948_v50, %v1791_v18  ;;  %v557_v0 = vadd.f32 %v556_v56, %v1770_v5 }
 0x183   : > { %v913_v24 = vadd.f32 %v912_v9, %v816_v21  ;;  %v1001_v57 = vmul.f32 %v816_v21, %v816_v21  ;;  %v817_v46 = vsel %vm739_vm11, %v553_v41, 0.0  ;;  %v1988_v52 = vpop.f32.mrb[27].mxu0  ;;  %v1990_v61 = vpop.f32.mrb[27].mxu1  ;;  %v819_v47 = vsel %vm739_vm11, %v666_v48, 0.0 }
 0x184   : > { %v851_v30 = vadd.f32 %v850_v27, %v817_v46  ;;  %v1002_v63 = vmul.f32 %v817_v46, %v817_v46  ;;  %v818_v49 = vsel %vm739_vm11, %v555_v20, 0.0  ;;  %v893_v3 = vadd.f32 %v892_v28, %v819_v47 }
 0x185   : > { %v1097_v2 = vadd.f32 %v1096_v32, %v1001_v57  ;;  %v1004_v11 = vmul.f32 %v819_v47, %v819_v47  ;;  %v872_v23 = vadd.f32 %v871_v40, %v818_v49  ;;  %v1003_v62 = vmul.f32 %v818_v49, %v818_v49 }
 0x186   : > { %v1035_v12 = vadd.f32 %v1034_v35, %v1002_v63  ;;  %v670_v15 = vadd.f32 %v669_v58, %v1782_v13  ;;  %v559_v22 = vadd.f32 %v558_v51, %v1789_v17  ;;  %v672_v14 = vadd.f32 %v671_v10, %v1791_v18 }
 0x187   : > { %v1077_v9 = vadd.f32 %v1076_v45, %v1004_v11  ;;  %v1056_v6 = vadd.f32 %v1055_v55, %v1003_v62  ;;  %v820_v31 = vsel %vm739_vm11, %v668_v1, 0.0  ;;  %v821_v16 = vsel %vm740_vm12, %v557_v0, 0.0 }
 0x188   : > { %v563_v50 = vadd.f32 %v562_v7, %v1770_v5  ;;  %v572_v32 = vpop.f32.mrb[28].mxu0  ;;  %v2008_v56 = vpop.f32.mrb[28].mxu1  ;;  %v914_v27 = vadd.f32 %v913_v24, %v820_v31  ;;  %v1005_v58 = vmul.f32 %v820_v31, %v820_v31  ;;  %v852_v29 = vadd.f32 %v851_v30, %v821_v16 }
 0x189   : > { %v1006_v51 = vmul.f32 %v821_v16, %v821_v16  ;;  %v574_v28 = vpop.f32.mrb[29].mxu0  ;;  %v2010_v10 = vpop.f32.mrb[29].mxu1  ;;  %v823_v33 = vsel %vm740_vm12, %v670_v15, 0.0  ;;  %v822_v37 = vsel %vm740_vm12, %v559_v22, 0.0  ;;  %v824_v34 = vsel %vm740_vm12, %v672_v14, 0.0 }
 0x18a   : > { %v825_v25 = vsel %vm741_vm13, %v563_v50, 0.0  ;;  %v2020_v7 = vpop.f32.mrb[30].mxu0  ;;  %v2022_v35 = vpop.f32.mrb[30].mxu1  ;;  %v1098_v40 = vadd.f32 %v1097_v2, %v1005_v58  ;;  %v894_v41 = vadd.f32 %v893_v3, %v823_v33  ;;  %v1008_v45 = vmul.f32 %v823_v33, %v823_v33 }
 0x18b   : > { %v1036_v19 = vadd.f32 %v1035_v12, %v1006_v51  ;;  %v2024_v21 = vpop.f32.mrb[31].mxu0  ;;  %v2026_v48 = vpop.f32.mrb[31].mxu1  ;;  %v873_v20 = vadd.f32 %v872_v23, %v822_v37  ;;  %v1007_v55 = vmul.f32 %v822_v37, %v822_v37  ;;  %v915_v24 = vadd.f32 %v914_v27, %v824_v34 }
 0x18c   : > { %v1009_v38 = vmul.f32 %v824_v34, %v824_v34  ;;  %v1078_v57 = vadd.f32 %v1077_v9, %v1008_v45  ;;  %v853_v46 = vadd.f32 %v852_v29, %v825_v25  ;;  %v1010_v30 = vmul.f32 %v825_v25, %v825_v25 }
 0x18d   : > { %v676_v63 = vadd.f32 %v1971_v39, %v1782_v13  ;;  %v1057_v47 = vadd.f32 %v1056_v6, %v1007_v55  ;;  %v565_v2 = vadd.f32 %v1974_v42, %v1789_v17  ;;  %v678_v3 = vadd.f32 %v1976_v44, %v1791_v18 }
 0x18e   : > { %v1099_v49 = vadd.f32 %v1098_v40, %v1009_v38  ;;  %v1037_v11 = vadd.f32 %v1036_v19, %v1010_v30  ;;  %v567_v12 = vadd.f32 %v1982_v36, %v1770_v5  ;;  %v680_v62 = vadd.f32 %v1984_v26, %v1782_v13 }
 0x18f   : > { %v827_v23 = vsel %vm741_vm13, %v676_v63, 0.0  ;;  %v826_v0 = vsel %vm741_vm13, %v565_v2, 0.0  ;;  %v828_v42 = vsel %vm741_vm13, %v678_v3, 0.0  ;;  %v569_v6 = vadd.f32 %v1988_v52, %v1789_v17 }
 0x190   : > { %v895_v1 = vadd.f32 %v894_v41, %v827_v23  ;;  %v1012_v39 = vmul.f32 %v827_v23, %v827_v23  ;;  %v874_v9 = vadd.f32 %v873_v20, %v826_v0  ;;  %v1011_v44 = vmul.f32 %v826_v0, %v826_v0 }
 0x191   : > { %v916_v15 = vadd.f32 %v915_v24, %v828_v42  ;;  %v1013_v22 = vmul.f32 %v828_v42, %v828_v42  ;;  %v829_v36 = vsel %vm742_vm14, %v567_v12, 0.0  ;;  %v831_v26 = vsel %vm742_vm14, %v680_v62, 0.0 }
 0x192   : > { %v1079_v14 = vadd.f32 %v1078_v57, %v1012_v39  ;;  %v1058_v31 = vadd.f32 %v1057_v47, %v1011_v44  ;;  %v854_v43 = vadd.f32 %v853_v46, %v829_v36  ;;  %v1014_v50 = vmul.f32 %v829_v36, %v829_v36 }
 0x193   : > { %v1100_v16 = vadd.f32 %v1099_v49, %v1013_v22  ;;  %v896_v27 = vadd.f32 %v895_v1, %v831_v26  ;;  %v1016_v58 = vmul.f32 %v831_v26, %v831_v26  ;;  %v830_v29 = vsel %vm742_vm14, %v569_v6, 0.0 }
 0x194   : > { %v682_v51 = vadd.f32 %v1990_v61, %v1791_v18  ;;  %v1038_v33 = vadd.f32 %v1037_v11, %v1014_v50  ;;  %v875_v37 = vadd.f32 %v874_v9, %v830_v29  ;;  %v1015_v34 = vmul.f32 %v830_v29, %v830_v29 }
 0x195   : > { %v573_v25 = vadd.f32 %v572_v32, %v1770_v5  ;;  %v1080_v40 = vadd.f32 %v1079_v14, %v1016_v58  ;;  %v686_v19 = vadd.f32 %v2008_v56, %v1782_v13  ;;  %v575_v41 = vadd.f32 %v574_v28, %v1789_v17 }
 0x196   : > { %v832_v52 = vsel %vm742_vm14, %v682_v51, 0.0  ;;  %v1059_v45 = vadd.f32 %v1058_v31, %v1015_v34  ;;  %v688_v47 = vadd.f32 %v2010_v10, %v1791_v18  ;;  %v577_v49 = vadd.f32 %v2020_v7, %v1770_v5 }
 0x197   : > { %v917_v20 = vadd.f32 %v916_v15, %v832_v52  ;;  %v1017_v55 = vmul.f32 %v832_v52, %v832_v52  ;;  %v833_v61 = vsel %vm743_vm15, %v573_v25, 0.0  ;;  %v835_v32 = vsel %vm743_vm15, %v686_v19, 0.0 }
 0x198   : > { %v855_v24 = vadd.f32 %v854_v43, %v833_v61  ;;  %v1018_v38 = vmul.f32 %v833_v61, %v833_v61  ;;  %v834_v53 = vsel %vm743_vm15, %v575_v41, 0.0  ;;  %v897_v46 = vadd.f32 %v896_v27, %v835_v32 }
 0x199   : > { %v1101_v57 = vadd.f32 %v1100_v16, %v1017_v55  ;;  %v1020_v30 = vmul.f32 %v835_v32, %v835_v32  ;;  %v876_v56 = vadd.f32 %v875_v37, %v834_v53  ;;  %v1019_v28 = vmul.f32 %v834_v53, %v834_v53 }
 0x19a   : > { %v1039_v63 = vadd.f32 %v1038_v33, %v1018_v38  ;;  %v690_v3 = vadd.f32 %v2022_v35, %v1782_v13  ;;  %v579_v11 = vadd.f32 %v2024_v21, %v1789_v17  ;;  %v692_v23 = vadd.f32 %v2026_v48, %v1791_v18 }
 0x19b   : > { %v1081_v2 = vadd.f32 %v1080_v40, %v1020_v30  ;;  %v1060_v12 = vadd.f32 %v1059_v45, %v1019_v28  ;;  %v836_v62 = vsel %vm743_vm15, %v688_v47, 0.0  ;;  %v837_v10 = vsel %vm744_vm0, %v577_v49, 0.0 }
 0x19c   : > { %v918_v1 = vadd.f32 %v917_v20, %v836_v62  ;;  %v1021_v39 = vmul.f32 %v836_v62, %v836_v62  ;;  %v856_v5 = vadd.f32 %v855_v24, %v837_v10  ;;  %v1022_v7 = vmul.f32 %v837_v10, %v837_v10 }
 0x19d   : > { %v839_v13 = vsel %vm744_vm0, %v690_v3, 0.0  ;;  %v838_v17 = vsel %vm744_vm0, %v579_v11, 0.0  ;;  %v840_v18 = vsel %vm744_vm0, %v692_v23, 0.0  ;;  %v934_v35 = vunpack.c.0.s8 %v1879_v8 }
 0x19e   : > { %v1102_v54 = vadd.f32 %v1101_v57, %v1021_v39  ;;  %v857_v21 = vrot.slane %v856_v5, 4  ;;  %v1040_v48 = vadd.f32 %v1039_v63, %v1022_v7  ;;  %v898_v0 = vadd.f32 %v897_v46, %v839_v13 }
 0x19f   : > { %v1024_v42 = vmul.f32 %v839_v13, %v839_v13  ;;  %v877_v9 = vadd.f32 %v876_v56, %v838_v17  ;;  %v1023_v44 = vmul.f32 %v838_v17, %v838_v17  ;;  %v919_v15 = vadd.f32 %v918_v1, %v840_v18 }
 0x1a0   : > { %v858_v22 = vadd.f32 %v857_v21, %v856_v5  ;;  %v1041_v14 = vrot.slane %v1040_v48, 4  ;;  %v899_v36 = vrot.slane %v898_v0, 4  ;;  %v1025_v26 = vmul.f32 %v840_v18, %v840_v18 }
 0x1a1   : > { %v1082_v6 = vadd.f32 %v1081_v2, %v1024_v42  ;;  %v878_v31 = vrot.slane %v877_v9, 4  ;;  %v1061_v16 = vadd.f32 %v1060_v12, %v1023_v44  ;;  %v920_v43 = vrot.slane %v919_v15, 4 }
 0x1a2   : > { %v859_v4 = vrot.slane %v858_v22, 2  ;;  %v1042_v50 = vadd.f32 %v1041_v14, %v1040_v48  ;;  %v900_v27 = vadd.f32 %v899_v36, %v898_v0  ;;  %v1103_v8 = vadd.f32 %v1102_v54, %v1025_v26  ;;  %v961_v26 = vld [vmem:[#allocation8] sm:$0xf] }
 0x1a3   : > { %v1083_v58 = vrot.slane %v1082_v6, 4  ;;  %v879_v29 = vadd.f32 %v878_v31, %v877_v9  ;;  %v1062_v51 = vrot.slane %v1061_v16, 4  ;;  %v921_v33 = vadd.f32 %v920_v43, %v919_v15  ;;  %v841_v15 = vld [vmem:[#allocation7] sm:$0xf] }
 0x1a4   : > { %v860_v37 = vadd.f32 %v859_v4, %v858_v22  ;;  %v1043_v34 = vrot.slane %v1042_v50, 2  ;;  %v901_v25 = vrot.slane %v900_v27, 2  ;;  %v1104_v40 = vrot.slane %v1103_v8, 4 }
 0x1a5   : > { %v1084_v52 = vadd.f32 %v1083_v58, %v1082_v6  ;;  %v880_v19 = vrot.slane %v879_v29, 2  ;;  %v1063_v41 = vadd.f32 %v1062_v51, %v1061_v16  ;;  %v922_v45 = vrot.slane %v921_v33, 2 }
 0x1a6   : > { %v861_v20 = vrot.slane %v860_v37, 1  ;;  %v1044_v55 = vadd.f32 %v1043_v34, %v1042_v50  ;;  %v902_v61 = vadd.f32 %v901_v25, %v900_v27  ;;  %v1105_v24 = vadd.f32 %v1104_v40, %v1103_v8 }
 0x1a7   : > { %v1085_v38 = vrot.slane %v1084_v52, 2  ;;  %v881_v32 = vadd.f32 %v880_v19, %v879_v29  ;;  %v1064_v53 = vrot.slane %v1063_v41, 2  ;;  %v923_v57 = vadd.f32 %v922_v45, %v921_v33 }
 0x1a8   : > { %v862_v46 = vadd.f32 %v861_v20, %v860_v37  ;;  %v1045_v30 = vrot.slane %v1044_v55, 1  ;;  %v903_v56 = vrot.slane %v902_v61, 1  ;;  %v1106_v63 = vrot.slane %v1105_v24, 2 }
 0x1a9   : > { %v1086_v28 = vadd.f32 %v1085_v38, %v1084_v52  ;;  %v882_v47 = vrot.slane %v881_v32, 1  ;;  %v1065_v49 = vadd.f32 %v1064_v53, %v1063_v41  ;;  %v924_v2 = vrot.slane %v923_v57, 1 }
 0x1aa   : > { %v1046_v3 = vadd.f32 %v1045_v30, %v1044_v55  ;;  %v904_v11 = vadd.f32 %v903_v56, %v902_v61  ;;  %v1107_v23 = vadd.f32 %v1106_v63, %v1105_v24  ;;  %v937_v12 = vsub.s32 %v934_v35, %v1756_v60 }
 0x1ab   : > { %v1087_v62 = vrot.slane %v1086_v28, 1  ;;  %v883_v10 = vadd.f32 %v882_v47, %v881_v32  ;;  %v1066_v1 = vrot.slane %v1065_v49, 1  ;;  %v925_v39 = vadd.f32 %v924_v2, %v923_v57 }
 0x1ac   : > { %v1108_v5 = vrot.slane %v1107_v23, 1  ;;  %vm2091_vm1 = vcmp.lt.s32.totalorder %v288_v59, 512 }
 0x1ad   : > { %v1088_v7 = vadd.f32 %v1087_v62, %v1086_v28  ;;  %v930_v13 = vcombine.low %v862_v46, %v883_v10  ;;  %v1067_v17 = vadd.f32 %v1066_v1, %v1065_v49  ;;  %v931_v18 = vcombine.low %v904_v11, %v925_v39 }
 0x1ae   : > { %v1109_v54 = vadd.f32 %v1108_v5, %v1107_v23 }
 0x1af   : > { %v938_v21 = vrot.slane %v930_v13, %v937_v12  ;;  %v945_v48 = vrot.slane %v931_v18, %v937_v12  ;;  %v1114_v0 = vcombine.low %v1046_v3, %v1067_v17 }
 0x1b0   : > { %v1115_v42 = vcombine.low %v1088_v7, %v1109_v54 }
 0x1b1   : > { %v946_v9 = vcombine.low %v938_v21, %v945_v48  ;;  %v1122_v44 = vrot.slane %v1114_v0, %v937_v12 }
 0x1b2   : > { %v1129_v60 = vrot.slane %v1115_v42, %v937_v12 }
 0x1b3   : > { %v953_v35 = vrot.slane %v946_v9, %v937_v12 }
 0x1b4   : > { %v1130_v14 = vcombine.low %v1122_v44, %v1129_v60 }
 0x1b5   : > { %v955_v36 = vadd.f32 %v953_v35, %v841_v15 }
 0x1b6   : > { %v1137_v6 = vrot.slane %v1130_v14, %v937_v12 }
 0x1b7   : > { %960 = vst.msk [vmem:[#allocation7] sm:$0xf] %vm2091_vm1, %v955_v36 }
 0x1b8   : > { %1471 = shalt.err (!%p1468_p0)
}
 0x1b9   : > { %s1472_s10 = scalar_lea.hbm %s2167_s3, 64 }
 0x1ba   : > { %p1473_p2 = scmp.ne.s32.totalorder %s2167_s3, %s1472_s10  ;;  %p1478_p3 = scmp.lt.u32.totalorder %s1472_s10, %s2167_s3 }
 0x1bc   : > { %p1474_p11 = pnand %p1473_p2, %p1306_p9 }
 0x1be   : > { %p1475_p13 = pneg %p1474_p11 }
 0x1c0   : > { %p1480_p6 = pnand %p1478_p3, %p1475_p13 }
 0x1c2   : > { %1483 = shalt.err (!%p1480_p6)
}
 0x1c3   : > { %1288 = dma.vmem_to_hbm [thread:$0]  (%p1306_p9), %s1149_s26, 64, %s2167_s3, [#allocation4]   ;;  %v1139_v59 = vadd.f32 %v1137_v6, %v961_v26 }
 0x1c4   : > { %s1484_s29 = scalar_lea.vmem %s2098_s6, 64  ;;  %p1491_p4 = scmp.lt.s32.totalorder %s2098_s6, %s2098_s6 }
 0x1c5   : > { %1140 = vst.msk [vmem:[#allocation8] sm:$0xf] %vm2091_vm1, %v1139_v59  ;;  %p1485_p7 = scmp.ne.s32.totalorder %s2098_s6, %s1484_s29  ;;  %p1492_p5 = scmp.lt.s32.totalorder %s1484_s29, %s1484_s29 }
 0x1c7   : > { %p1486_p10 = pnand %p1485_p7, %p1306_p9  ;;  %p1493_p8 = por %p1492_p5, %p1491_p4 }
 0x1c9   : > { %p1487_p1 = pneg %p1486_p10 }
 0x1cb   : > { %p1494_p12 = pnand %p1493_p8, %p1487_p1 }
 0x1cd   : > { %1497 = shalt.err (!%p1494_p12)
}
 0x1ce   : > { %s1498_s27 = scalar_lea.hbm %s2168_s4, 64 }
 0x1cf   : > { %p1499_p0 = scmp.ne.s32.totalorder %s2168_s4, %s1498_s27  ;;  %p1504_p13 = scmp.lt.u32.totalorder %s1498_s27, %s2168_s4 }
 0x1d1   : > { %p1500_p2 = pnand %p1499_p0, %p1306_p9 }
 0x1d3   : > { %p1501_p11 = pneg %p1500_p2 }
 0x1d5   : > { %p1506_p3 = pnand %p1504_p13, %p1501_p11 }
 0x1d7   : > { %1509 = shalt.err (!%p1506_p3)
}
 0x1d8   : > { %1290 = dma.vmem_to_hbm [thread:$0]  (%p1306_p9), %s2098_s6, 64, %s2168_s4, [#allocation9]  }
 0x1d9   : > { %1535 = dma.done.wait (%p1306_p9), [#allocation4], 64  }
 0x1da   : > { %1537 = vsyncadd (%p1306_p9), [#allocation4], 4294967232 }
 0x1db   : > { %1539 = dma.done.wait (%p1306_p9), [#allocation9], 64  }
 0x1dc   : > { %1541 = vsyncadd (%p1306_p9), [#allocation9], 4294967232 }
 0x1dd PF: > { %p18_p6 = scmp.ge.s32.totalorder %s1639_s25, 4   ;;  %s2183_s15 = smov %s1548_s16 }
 0x1de   : > { %s2184_s16 = smov %s1552_s17  ;;  %s2185_s17 = smov %s1665_s14 }
 0x1df   : > { %s2186_s18 = smov %s1639_s25  ;;  %20 = sbr.rel (!%p18_p6) target bundleno = 6 (0x6), region = 85 }
 0x1e6   :  { %1176 = vsyncpa [#allocation3], 1 }
 0x1e7   :  { %1178 = vsyncpa [#allocation3 + $0x1], 1 }
 0x1e8   :  { %1179 = vsyncpa [#allocation6], 1 }
 0x1e9   :  { %1180 = vsyncpa [#allocation4], 1 }
 0x1ea   :  { %1182 = vsyncpa [#allocation4 + $0x1], 1 }
 0x1eb   :  { %1183 = vsyncpa [#allocation9], 1 }

</bundles_post_ra>
